<compile_context>
chip_gen: v6e
topology: v6e:2x2x1
jax: 0.10.0
libtpu: 0.0.40
codegen_flags: <defaults>
</compile_context>

<pallas_src>
import math

import jax
import jax.numpy as jnp
from jax.experimental import pallas as pl
from jax.experimental.pallas import tpu as pltpu


# --------------------------- BatchNorm statistics ----------------------------
def bn_stats_kernel(x_ref, sum_ref, sq_ref):
    @pl.when(pl.program_id(0) == 0)
    def _():
        sum_ref[...] = jnp.zeros_like(sum_ref)
        sq_ref[...] = jnp.zeros_like(sq_ref)

    x = x_ref[...]                                   # (rows, F)
    sum_ref[...] += jnp.sum(x, axis=0, keepdims=True)
    sq_ref[...] += jnp.sum(x * x, axis=0, keepdims=True)


def bn_stats_pallas(x2d, rows_per_block):
    M, F = x2d.shape
    nblk = M // rows_per_block
    s, sq = pl.pallas_call(
        bn_stats_kernel,
        out_shape=(jax.ShapeDtypeStruct((1, F), jnp.float32),
                   jax.ShapeDtypeStruct((1, F), jnp.float32)),
        grid=(nblk,),
        in_specs=[pl.BlockSpec((rows_per_block, F), lambda i: (i, 0))],
        out_specs=[pl.BlockSpec((1, F), lambda i: (0, 0)),
                   pl.BlockSpec((1, F), lambda i: (0, 0))],
        compiler_params=pltpu.CompilerParams(dimension_semantics=("arbitrary",)),
    )(x2d)
    return s[0], sq[0]


# ------------------ hoisted input projection (BN folded in) ------------------
def in_proj_kernel(x_ref, wf_ref, wb_ref, bf_ref, bb_ref, gf_ref, gb_ref):
    x = x_ref[...]                                   # (rows, F)
    gf_ref[...] = jnp.dot(x, wf_ref[...], preferred_element_type=jnp.float32) + bf_ref[...]
    gb_ref[...] = jnp.dot(x, wb_ref[...], preferred_element_type=jnp.float32) + bb_ref[...]


def in_proj_pallas(x2d, w_f, w_b, b_f, b_b, rows_per_block):
    M, F = x2d.shape
    H3 = w_f.shape[1]
    nblk = M // rows_per_block
    return pl.pallas_call(
        in_proj_kernel,
        out_shape=(jax.ShapeDtypeStruct((M, H3), jnp.float32),
                   jax.ShapeDtypeStruct((M, H3), jnp.float32)),
        grid=(nblk,),
        in_specs=[
            pl.BlockSpec((rows_per_block, F), lambda i: (i, 0)),
            pl.BlockSpec((F, H3), lambda i: (0, 0)),
            pl.BlockSpec((F, H3), lambda i: (0, 0)),
            pl.BlockSpec((1, H3), lambda i: (0, 0)),
            pl.BlockSpec((1, H3), lambda i: (0, 0)),
        ],
        out_specs=[
            pl.BlockSpec((rows_per_block, H3), lambda i: (i, 0)),
            pl.BlockSpec((rows_per_block, H3), lambda i: (i, 0)),
        ],
        compiler_params=pltpu.CompilerParams(dimension_semantics=("parallel",)),
    )(x2d, w_f, w_b, b_f, b_b)


# -------------------------- GRU recurrence kernels ---------------------------
def _gru_gates(gi, gh, h, H):
    r = jax.nn.sigmoid(gi[:, 0:H] + gh[:, 0:H])
    z = jax.nn.sigmoid(gi[:, H:2 * H] + gh[:, H:2 * H])
    n = jnp.tanh(gi[:, 2 * H:3 * H] + r * gh[:, 2 * H:3 * H])
    return (1.0 - z) * n + z * h


def gru_fwd_kernel(len_ref, gi_ref, whh_ref, bhh_ref, y_ref, hn_ref, h_scr):
    c = pl.program_id(0)
    CT = gi_ref.shape[0]
    H = h_scr.shape[-1]

    @pl.when(c == 0)
    def _():
        h_scr[...] = jnp.zeros_like(h_scr)

    lens = len_ref[...]                              # (B, 1) int32
    whh = whh_ref[...]
    bhh = bhh_ref[...]
    t0 = c * CT

    def step(i, h):
        gi = gi_ref[i]                               # (B, 3H)
        gh = jnp.dot(h, whh, preferred_element_type=jnp.float32) + bhh
        h_new = _gru_gates(gi, gh, h, H)
        valid = (t0 + i) < lens                      # (B, 1) packed-seq mask
        y_ref[i] = jnp.where(valid, h_new, 0.0)
        return jnp.where(valid, h_new, h)

    h = jax.lax.fori_loop(0, CT, step, h_scr[...], unroll=True)
    h_scr[...] = h

    @pl.when(c == pl.num_programs(0) - 1)
    def _():
        hn_ref[...] = h


def gru_bwd_sum_kernel(len_ref, gi_ref, yf_ref, whh_ref, bhh_ref,
                       yo_ref, hn_ref, h_scr):
    c = pl.program_id(0)
    nc = pl.num_programs(0)
    CT = gi_ref.shape[0]
    H = h_scr.shape[-1]

    @pl.when(c == 0)
    def _():
        h_scr[...] = jnp.zeros_like(h_scr)

    lens = len_ref[...]
    whh = whh_ref[...]
    bhh = bhh_ref[...]
    t0 = (nc - 1 - c) * CT                           # global time base of this chunk

    def step(i, h):
        li = CT - 1 - i                              # walk the chunk backwards in time
        gi = gi_ref[li]
        gh = jnp.dot(h, whh, preferred_element_type=jnp.float32) + bhh
        h_new = _gru_gates(gi, gh, h, H)
        valid = (t0 + li) < lens
        # fused direction sum: out = y_fwd + y_bwd (in place via aliasing)
        yo_ref[li] = yf_ref[li] + jnp.where(valid, h_new, 0.0)
        return jnp.where(valid, h_new, h)

    h = jax.lax.fori_loop(0, CT, step, h_scr[...], unroll=True)
    h_scr[...] = h

    @pl.when(c == nc - 1)
    def _():
        hn_ref[...] = h


def gru_fwd_pallas(gi, lengths2, whh_t, bhh, ct):
    T_pad, B, H3 = gi.shape
    H = H3 // 3
    nc = T_pad // ct
    grid_spec = pltpu.PrefetchScalarGridSpec(
        num_scalar_prefetch=0,
        grid=(nc,),
        in_specs=[
            pl.BlockSpec((B, 1), lambda c: (0, 0)),
            pl.BlockSpec((ct, B, H3), lambda c: (c, 0, 0)),
            pl.BlockSpec((H, H3), lambda c: (0, 0)),
            pl.BlockSpec((1, H3), lambda c: (0, 0)),
        ],
        out_specs=[
            pl.BlockSpec((ct, B, H), lambda c: (c, 0, 0)),
            pl.BlockSpec((B, H), lambda c: (0, 0)),
        ],
        scratch_shapes=[pltpu.VMEM((B, H), jnp.float32)],
    )
    return pl.pallas_call(
        gru_fwd_kernel,
        out_shape=(jax.ShapeDtypeStruct((T_pad, B, H), jnp.float32),
                   jax.ShapeDtypeStruct((B, H), jnp.float32)),
        grid_spec=grid_spec,
        compiler_params=pltpu.CompilerParams(dimension_semantics=("arbitrary",)),
    )(lengths2, gi, whh_t, bhh)


def gru_bwd_sum_pallas(gi, y_f, lengths2, whh_t, bhh, ct):
    T_pad, B, H3 = gi.shape
    H = H3 // 3
    nc = T_pad // ct
    rev = lambda c: (nc - 1 - c, 0, 0)               # time reversal via index_map
    grid_spec = pltpu.PrefetchScalarGridSpec(
        num_scalar_prefetch=0,
        grid=(nc,),
        in_specs=[
            pl.BlockSpec((B, 1), lambda c: (0, 0)),
            pl.BlockSpec((ct, B, H3), rev),
            pl.BlockSpec((ct, B, H), rev),
            pl.BlockSpec((H, H3), lambda c: (0, 0)),
            pl.BlockSpec((1, H3), lambda c: (0, 0)),
        ],
        out_specs=[
            pl.BlockSpec((ct, B, H), rev),
            pl.BlockSpec((B, H), lambda c: (0, 0)),
        ],
        scratch_shapes=[pltpu.VMEM((B, H), jnp.float32)],
    )
    return pl.pallas_call(
        gru_bwd_sum_kernel,
        out_shape=(jax.ShapeDtypeStruct((T_pad, B, H), jnp.float32),
                   jax.ShapeDtypeStruct((B, H), jnp.float32)),
        grid_spec=grid_spec,
        input_output_aliases={2: 0},                 # reuse y_f's buffer for the sum
        compiler_params=pltpu.CompilerParams(dimension_semantics=("arbitrary",)),
    )(lengths2, gi, y_f, whh_t, bhh)


# ------------------------------- full module ---------------------------------
def deepspeech_block(x, lengths, params, out_time=None, chunk_t=8):
    """x: (T, B, F); lengths: (B,). Returns (out, hidden) like DeepSpeechBlock.

    If out_time (static int = max(lengths)) is None, the full-T output is
    returned (zeros past each sequence), keeping the function jittable.
    """
    T, B, F = x.shape
    H = params["w_hh_f"].shape[1]
    x = x.astype(jnp.float32)
    lengths = lengths.astype(jnp.int32)

    ct = chunk_t
    T_pad = -(-T // ct) * ct
    x_p = jnp.pad(x, ((0, T_pad - T), (0, 0), (0, 0))) if T_pad != T else x
    x2d = x_p.reshape(T_pad * B, F)
    rows = B * ct                                    # row tile (multiple of 8)

    # BN batch statistics (zero-padded rows contribute nothing; divide by real N)
    s, sq = bn_stats_pallas(x2d, rows)
    n_real = T * B
    mean = s / n_real
    var = sq / n_real - mean * mean                  # biased variance (training BN)
    scale = params["gamma"] * jax.lax.rsqrt(var + 1e-5)
    shift = params["beta"] - mean * scale

    # Fold BN affine into the input-projection weights/biases (per direction).
    wf_t = params["w_ih_f"].T.astype(jnp.float32)    # (F, 3H)
    wb_t = params["w_ih_b"].T.astype(jnp.float32)
    w_f_eff = wf_t * scale[:, None]
    w_b_eff = wb_t * scale[:, None]
    b_f_eff = (params["b_ih_f"] + shift @ wf_t).reshape(1, 3 * H).astype(jnp.float32)
    b_b_eff = (params["b_ih_b"] + shift @ wb_t).reshape(1, 3 * H).astype(jnp.float32)

    # One big MXU GEMM for all timesteps / both directions.
    gi_f2d, gi_b2d = in_proj_pallas(x2d, w_f_eff, w_b_eff, b_f_eff, b_b_eff, rows)
    gi_f = gi_f2d.reshape(T_pad, B, 3 * H)
    gi_b = gi_b2d.reshape(T_pad, B, 3 * H)

    lengths2 = lengths.reshape(B, 1)
    whh_f_t = params["w_hh_f"].T.astype(jnp.float32)
    whh_b_t = params["w_hh_b"].T.astype(jnp.float32)
    bhh_f = params["b_hh_f"].reshape(1, 3 * H).astype(jnp.float32)
    bhh_b = params["b_hh_b"].reshape(1, 3 * H).astype(jnp.float32)

    y_f, h_f = gru_fwd_pallas(gi_f, lengths2, whh_f_t, bhh_f, ct)
    y_sum, h_b = gru_bwd_sum_pallas(gi_b, y_f, lengths2, whh_b_t, bhh_b, ct)

    out = y_sum[:T]
    if out_time is not None:                         # match pad_packed_sequence length
        out = out[:out_time]
    hidden = jnp.stack([h_f, h_b], axis=0)           # (2, B, H): [forward, backward]
    return out, hidden


# ------------------------------ pure-JAX reference ---------------------------
def reference(x, lengths, p, t_out):
    T, B, F = x.shape
    H = p["w_hh_f"].shape[1]
    xr = x.reshape(T * B, F)
    mean = xr.mean(0)
    var = ((xr - mean) ** 2).mean(0)
    xn = (x - mean) / jnp.sqrt(var + 1e-5) * p["gamma"] + p["beta"]

    def run_dir(w_ih, w_hh, b_ih, b_hh, reverse):
        h = jnp.zeros((B, H), jnp.float32)
        y = jnp.zeros((T, B, H), jnp.float32)
        ts = range(T - 1, -1, -1) if reverse else range(T)
        for t in ts:
            gi = xn[t] @ w_ih.T + b_ih
            gh = h @ w_hh.T + b_hh
            r = jax.nn.sigmoid(gi[:, :H] + gh[:, :H])
            z = jax.nn.sigmoid(gi[:, H:2 * H] + gh[:, H:2 * H])
            n = jnp.tanh(gi[:, 2 * H:] + r * gh[:, 2 * H:])
            h_new = (1 - z) * n + z * h
            mask = (t < lengths)[:, None]
            h = jnp.where(mask, h_new, h)
            y = y.at[t].set(jnp.where(mask, h_new, 0.0))
        return y, h

    yf, hf = run_dir(p["w_ih_f"], p["w_hh_f"], p["b_ih_f"], p["b_hh_f"], False)
    yb, hb = run_dir(p["w_ih_b"], p["w_hh_b"], p["b_ih_b"], p["b_hh_b"], True)
    return (yf + yb)[:t_out], jnp.stack([hf, hb], axis=0)


if __name__ == "__main__":
    T, B, F, H = 8, 2, 16, 32
    key = jax.random.PRNGKey(0)
    ks = jax.random.split(key, 10)
    x = jax.random.normal(ks[0], (T, B, F), jnp.float32)
    lengths = jnp.array([8, 5], jnp.int32)

    bound = 1.0 / math.sqrt(H)

    def u(k, shape):
        return jax.random.uniform(k, shape, jnp.float32, -bound, bound)

    params = dict(
        gamma=jnp.ones((F,), jnp.float32),
        beta=jnp.zeros((F,), jnp.float32),
        w_ih_f=u(ks[1], (3 * H, F)), w_hh_f=u(ks[2], (3 * H, H)),
        b_ih_f=u(ks[3], (3 * H,)), b_hh_f=u(ks[4], (3 * H,)),
        w_ih_b=u(ks[5], (3 * H, F)), w_hh_b=u(ks[6], (3 * H, H)),
        b_ih_b=u(ks[7], (3 * H,)), b_hh_b=u(ks[8], (3 * H,)),
    )

    t_out = int(lengths.max())                       # host-side static, keeps kernels jittable
    out, hidden = deepspeech_block(x, lengths, params, out_time=t_out)
    jax.block_until_ready((out, hidden))

    out_ref, hidden_ref = reference(x, lengths, params, t_out)
    assert out.shape == out_ref.shape and hidden.shape == (2, B, H)
    assert jnp.allclose(out, out_ref, atol=5e-4, rtol=5e-4)
    assert jnp.allclose(hidden, hidden_ref, atol=5e-4, rtol=5e-4)
    print("KERNEL_OK")
</pallas_src>

<mosaic_0001>
module attributes {stable_mosaic.version = 11 : i64} {
  func.func @bn_stats_kernel(%arg0: i32, %arg1: memref<16x16xf32, #tpu.memory_space<vmem>>, %arg2: memref<1x16xf32, #tpu.memory_space<vmem>>, %arg3: memref<1x16xf32, #tpu.memory_space<vmem>>) attributes {dimension_semantics = [#tpu.dimension_semantics<arbitrary>], iteration_bounds = array<i64: 1>, scalar_prefetch = 0 : i64, scratch_operands = 0 : i64, tpu.core_type = #tpu.core_type<tc>, window_params = [{transform_indices = @transform_0, window_bounds = array<i64: 16, 16>}, {pipeline_mode = #tpu.pipeline_mode<synchronous>, transform_indices = @transform_1, window_bounds = array<i64: 1, 16>}, {pipeline_mode = #tpu.pipeline_mode<synchronous>, transform_indices = @transform_2, window_bounds = array<i64: 1, 16>}]} {
    %c0_i32 = arith.constant 0 : i32
    %0 = arith.cmpi eq, %arg0, %c0_i32 : i32
    %1 = arith.extui %0 : i1 to i32
    %c0_i32_0 = arith.constant 0 : i32
    %2 = arith.cmpi ne, %1, %c0_i32_0 : i32
    scf.if %2 {
      %cst_11 = arith.constant 0.000000e+00 : f32
      %15 = vector.broadcast %cst_11 : f32 to vector<1x16xf32>
      %c0_12 = arith.constant 0 : index
      %c0_13 = arith.constant 0 : index
      %16 = vector.load %arg2[%c0_12, %c0_13] : memref<1x16xf32, #tpu.memory_space<vmem>>, vector<1x16xf32>
      tpu.vector_store %arg2[%c0_12, %c0_13], %15 {strides = array<i32>} : memref<1x16xf32, #tpu.memory_space<vmem>>, vector<1x16xf32>,
      %cst_14 = arith.constant 0.000000e+00 : f32
      %17 = vector.broadcast %cst_14 : f32 to vector<1x16xf32>
      %c0_15 = arith.constant 0 : index
      %c0_16 = arith.constant 0 : index
      %18 = vector.load %arg3[%c0_15, %c0_16] : memref<1x16xf32, #tpu.memory_space<vmem>>, vector<1x16xf32>
      tpu.vector_store %arg3[%c0_15, %c0_16], %17 {strides = array<i32>} : memref<1x16xf32, #tpu.memory_space<vmem>>, vector<1x16xf32>,
    } else {
    }
    %c0 = arith.constant 0 : index
    %c0_1 = arith.constant 0 : index
    %3 = vector.load %arg1[%c0, %c0_1] : memref<16x16xf32, #tpu.memory_space<vmem>>, vector<16x16xf32>
    %c0_2 = arith.constant 0 : index
    %c0_3 = arith.constant 0 : index
    %4 = vector.load %arg2[%c0_2, %c0_3] : memref<1x16xf32, #tpu.memory_space<vmem>>, vector<1x16xf32>
    %cst = arith.constant dense<0.000000e+00> : vector<16xf32>
    %5 = vector.multi_reduction <add>, %3, %cst [0] : vector<16x16xf32> to vector<16xf32>
    %6 = vector.shape_cast %5 : vector<16xf32> to vector<1x16xf32>
    %7 = arith.addf %4, %6 : vector<1x16xf32>
    %c0_4 = arith.constant 0 : index
    %c0_5 = arith.constant 0 : index
    %8 = vector.load %arg2[%c0_4, %c0_5] : memref<1x16xf32, #tpu.memory_space<vmem>>, vector<1x16xf32>
    tpu.vector_store %arg2[%c0_4, %c0_5], %7 {strides = array<i32>} : memref<1x16xf32, #tpu.memory_space<vmem>>, vector<1x16xf32>,
    %c0_6 = arith.constant 0 : index
    %c0_7 = arith.constant 0 : index
    %9 = vector.load %arg3[%c0_6, %c0_7] : memref<1x16xf32, #tpu.memory_space<vmem>>, vector<1x16xf32>
    %10 = arith.mulf %3, %3 : vector<16x16xf32>
    %cst_8 = arith.constant dense<0.000000e+00> : vector<16xf32>
    %11 = vector.multi_reduction <add>, %10, %cst_8 [0] : vector<16x16xf32> to vector<16xf32>
    %12 = vector.shape_cast %11 : vector<16xf32> to vector<1x16xf32>
    %13 = arith.addf %9, %12 : vector<1x16xf32>
    %c0_9 = arith.constant 0 : index
    %c0_10 = arith.constant 0 : index
    %14 = vector.load %arg3[%c0_9, %c0_10] : memref<1x16xf32, #tpu.memory_space<vmem>>, vector<1x16xf32>
    tpu.vector_store %arg3[%c0_9, %c0_10], %13 {strides = array<i32>} : memref<1x16xf32, #tpu.memory_space<vmem>>, vector<1x16xf32>,
    return
  }
  func.func @transform_0(%arg0: i32) -> (i32, i32) {
    %c0_i32 = arith.constant 0 : i32
    %c0_i32_0 = arith.constant 0 : i32
    return %arg0, %c0_i32 : i32, i32
  }
  func.func @transform_1(%arg0: i32) -> (i32, i32) {
    %c0_i32 = arith.constant 0 : i32
    %c0_i32_0 = arith.constant 0 : i32
    %c0_i32_1 = arith.constant 0 : i32
    return %c0_i32, %c0_i32_0 : i32, i32
  }
  func.func @transform_2(%arg0: i32) -> (i32, i32) {
    %c0_i32 = arith.constant 0 : i32
    %c0_i32_0 = arith.constant 0 : i32
    %c0_i32_1 = arith.constant 0 : i32
    return %c0_i32, %c0_i32_0 : i32, i32
  }
}

</mosaic_0001>

<bundles_post_ra>
// kernel: tpu_custom_call.1
= control target key start
LH: loop header
LB: loop body
LE: loop exit
PB: predicated region body
PF: predicated region fallthrough
CT: control target
= control target key end

     0   :  { %8 = vsyncpa [#allocation3], 0  ;;  %s198_s0 = inlined_call_operand.hbm [shape: f32[16,16], index: 0, kind: input, shape index: {}]   ;;  %s199_s1 = inlined_call_operand.hbm [shape: f32[1,16], index: 1, kind: output, shape index: {0}]   ;;  %s200_s2 = inlined_call_operand.hbm [shape: f32[1,16], index: 2, kind: output, shape index: {1}]  }
   0x1   :  { %9 = vsyncpa [#allocation4], 0 }
   0x2   :  { %10 = vsyncpa [#allocation7], 0  ;;  %s164_s9 = smov [#allocation2]  }
   0x3   :  { %s16_s10 = sshll.u32 %s164_s9, 4  ;;  %s17_s10 = int_to_ptr.vmem [resolvable:$true] %s16_s10 }
   0x4   :  { %s106_s11 = scalar_lea.vmem %s17_s10, 256  ;;  %p111_p1 = scmp.lt.s32.totalorder %s17_s10, %s17_s10 }
   0x5   :  { %p107_p0 = scmp.ne.s32.totalorder %s17_s10, %s106_s11  ;;  %p112_p2 = scmp.lt.s32.totalorder %s106_s11, %s106_s11 }
   0x7   :  { %p113_p3 = por %p112_p2, %p111_p1 }
   0x9   :  { %p114_p4 = pnand %p113_p3, %p107_p0 }
   0xb   :  { %117 = shalt.err (!%p114_p4)
}
   0xc   :  { %s165_s12 = smov 128   ;;  %s166_s13 = smov 8  }
   0xd   :  { %22 = dma.hbm_to_vmem [thread:$0]  %s198_s0, 256, %s17_s10, [#allocation3], %s165_s12, %s165_s12, %s166_s13  }
   0xe   :  { %158 = dma.done.wait [#allocation3], 256  }
   0xf   :  { %159 = vsyncadd [#allocation3], 4294967040  ;;  %vm30_vm0 = vcmask 122880   ;;  %v167_v0 = vmov 0.0   ;;  %vm36_vm1 = vcmask 130048   ;;  %v33_v1 = vld [vmem:[#allocation2] sm:$0xff] }
  0x10   :  { %31 = vst.msk [vmem:[#allocation5] sm:$0x1] %vm30_vm0, %v167_v0  ;;  %32 = vst.msk [vmem:[#allocation6] sm:$0x1] %vm30_vm0, %v167_v0  ;;  %v34_v2 = vld [vmem:[#allocation2 + $0x8] sm:$0xff]  ;;  %v37_v3 = vsel %vm36_vm1, %v33_v1, 0.0  ;;  %v50_v5 = vmul.f32 %v33_v1, %v33_v1 }
  0x11   :  { %v38_v4 = vsel %vm36_vm1, %v34_v2, 0.0  ;;  %v51_v6 = vmul.f32 %v34_v2, %v34_v2  ;;  %s168_s0 = smov [#allocation5]   ;;  %s169_s17 = smov [#allocation6]  }
  0x12   :  { %v39_v7 = vadd.f32 %v38_v4, %v37_v3  ;;  %v52_v8 = vsel %vm36_vm1, %v50_v5, 0.0  ;;  %s69_s16 = sshll.u32 %s168_s0, 4  ;;  %s79_s18 = sshll.u32 %s169_s17, 4  ;;  %s70_s16 = int_to_ptr.vmem [resolvable:$true] %s69_s16  ;;  %s80_s18 = int_to_ptr.vmem [resolvable:$true] %s79_s18 }
  0x13   :  { %v53_v9 = vsel %vm36_vm1, %v51_v6, 0.0  ;;  %s118_s19 = scalar_lea.vmem %s70_s16, 16  ;;  %s122_s20 = scalar_lea.vmem %s70_s16, 32 }
  0x14   :  { %v40_v10 = vrot.slane %v39_v7, 4  ;;  %v54_v11 = vadd.f32 %v53_v9, %v52_v8  ;;  %p119_p5 = scmp.ne.s32.totalorder %s70_s16, %s118_s19  ;;  %p123_p6 = scmp.lt.s32.totalorder %s70_s16, %s70_s16 }
  0x15   :  { %p124_p7 = scmp.lt.s32.totalorder %s122_s20, %s118_s19 }
  0x16   :  { %v41_v12 = vadd.f32 %v40_v10, %v39_v7  ;;  %v55_v13 = vrot.slane %v54_v11, 4 }
  0x17   :  { %v35_v20 = vld [vmem:[#allocation5] sm:$0x1]  ;;  %v49_v23 = vld [vmem:[#allocation6] sm:$0x1]  ;;  %p125_p8 = por %p124_p7, %p123_p6 }
  0x18   :  { %v42_v14 = vrot.slane %v41_v12, 2  ;;  %v56_v15 = vadd.f32 %v55_v13, %v54_v11 }
  0x19   :  { %p126_p9 = pnand %p125_p8, %p119_p5 }
  0x1a   :  { %v43_v16 = vadd.f32 %v42_v14, %v41_v12  ;;  %v57_v17 = vrot.slane %v56_v15, 2 }
  0x1c   :  { %v44_v18 = vrot.slane %v43_v16, 1  ;;  %v58_v19 = vadd.f32 %v57_v17, %v56_v15 }
  0x1e   :  { %v45_v21 = vadd.f32 %v44_v18, %v43_v16  ;;  %v59_v22 = vrot.slane %v58_v19, 1 }
  0x20   :  { %v46_v24 = vadd.f32 %v45_v21, %v35_v20  ;;  %v60_v25 = vadd.f32 %v59_v22, %v58_v19 }
  0x22   :  { %48 = vst.msk [vmem:[#allocation5] sm:$0x1] %vm30_vm0, %v46_v24  ;;  %v61_v26 = vadd.f32 %v60_v25, %v49_v23 }
  0x23   :  { %129 = shalt.err (!%p126_p9)
}
  0x24   :  { %72 = dma.vmem_to_hbm [thread:$0]  %s70_s16, 16, %s199_s1, [#allocation4]   ;;  %62 = vst.msk [vmem:[#allocation6] sm:$0x1] %vm30_vm0, %v61_v26 }
  0x25   :  { %s138_s23 = scalar_lea.vmem %s80_s18, 16  ;;  %s142_s24 = scalar_lea.vmem %s80_s18, 32 }
  0x26   :  { %p139_p10 = scmp.ne.s32.totalorder %s80_s18, %s138_s23  ;;  %p143_p11 = scmp.lt.s32.totalorder %s80_s18, %s80_s18 }
  0x27   :  { %p144_p12 = scmp.lt.s32.totalorder %s142_s24, %s138_s23 }
  0x29   :  { %p145_p13 = por %p144_p12, %p143_p11 }
  0x2b   :  { %p146_p0 = pnand %p145_p13, %p139_p10 }
  0x2d   :  { %149 = shalt.err (!%p146_p0)
}
  0x2e   :  { %82 = dma.vmem_to_hbm [thread:$0]  %s80_s18, 16, %s200_s2, [#allocation7]  }
  0x2f   :  { %160 = dma.done.wait [#allocation4], 16  }
  0x30   :  { %161 = vsyncadd [#allocation4], 4294967280 }
  0x31   :  { %162 = dma.done.wait [#allocation7], 16  }
  0x32   :  { %163 = vsyncadd [#allocation7], 4294967280 }
  0x33   :  { %89 = vsyncpa [#allocation3], 1 }
  0x34   :  { %90 = vsyncpa [#allocation4], 1 }
  0x35   :  { %91 = vsyncpa [#allocation7], 1 }

</bundles_post_ra>
